<compile_context>
chip_gen: v7x
topology: tpu7x:2x2x1
jax: 0.10.0
libtpu: 0.0.40
codegen_flags: <defaults>
</compile_context>

<pallas_src>
import jax
import jax.numpy as jnp
from jax.experimental import pallas as pl
from jax.experimental.pallas import tpu as pltpu


def _leaky_relu(x, slope=0.2):
    return jnp.where(x >= 0, x, slope * x)


def _encoder_kernel(x_ref, w1_ref, b1_ref, w2_ref, b2_ref, w3_ref, b3_ref, o_ref):
    """Fused 3-layer MLP: (Linear + LeakyReLU) x2 -> Linear."""
    x = x_ref[...].astype(jnp.float32)

    h = jnp.dot(x, w1_ref[...], preferred_element_type=jnp.float32) + b1_ref[...]
    h = _leaky_relu(h)
    # Dropout(0.1): identity at inference time.

    h = jnp.dot(h, w2_ref[...], preferred_element_type=jnp.float32) + b2_ref[...]
    h = _leaky_relu(h)
    # Dropout(0.1): identity at inference time.

    z = jnp.dot(h, w3_ref[...], preferred_element_type=jnp.float32) + b3_ref[...]
    o_ref[...] = z.astype(o_ref.dtype)


def _pick_batch_tile(batch):
    """Largest power-of-two batch tile (<=1024) that divides the batch."""
    for cand in (1024, 512, 256, 128, 64, 32, 16, 8):
        if batch % cand == 0:
            return cand
    # Small / ragged batch: one full-array block (always legal).
    return batch


def aae_mnist_encoder_forward(x, w1, b1, w2, b2, w3, b3):
    """Run the fused encoder. Weights are (in, out); biases are (1, out)."""
    B, D = x.shape
    L = w3.shape[1]
    tile_b = _pick_batch_tile(B)
    grid = (B // tile_b,)

    itemsize = jnp.dtype(x.dtype).itemsize
    flops = 2 * B * D * (D + D + L)
    bytes_accessed = itemsize * (
        x.size + w1.size + b1.size + w2.size + b2.size + w3.size + b3.size + B * L
    )

    return pl.pallas_call(
        _encoder_kernel,
        out_shape=jax.ShapeDtypeStruct((B, L), x.dtype),
        grid=grid,
        in_specs=[
            pl.BlockSpec((tile_b, D), lambda i: (i, 0)),   # x tile
            pl.BlockSpec((D, D), lambda i: (0, 0)),        # w1 (resident)
            pl.BlockSpec((1, D), lambda i: (0, 0)),        # b1
            pl.BlockSpec((D, D), lambda i: (0, 0)),        # w2 (resident)
            pl.BlockSpec((1, D), lambda i: (0, 0)),        # b2
            pl.BlockSpec((D, L), lambda i: (0, 0)),        # w3 (resident)
            pl.BlockSpec((1, L), lambda i: (0, 0)),        # b3
        ],
        out_specs=pl.BlockSpec((tile_b, L), lambda i: (i, 0)),
        compiler_params=pltpu.CompilerParams(
            dimension_semantics=("parallel",),
        ),
        cost_estimate=pl.CostEstimate(
            flops=flops, transcendentals=0, bytes_accessed=bytes_accessed
        ),
    )(x, w1, b1, w2, b2, w3, b3)


class AAE_MNIST_Encoder:
    """JAX/Pallas equivalent of the PyTorch AAE_MNIST_Encoder (inference)."""

    def __init__(self, in_channels, latent_size, key):
        self.in_channels = in_channels
        self.latent_size = latent_size
        k1, k2, k3, k4, k5, k6 = jax.random.split(key, 6)

        def linear_init(kw, kb, fan_in, fan_out):
            # Match torch.nn.Linear default: U(-1/sqrt(fan_in), 1/sqrt(fan_in)).
            bound = 1.0 / (fan_in ** 0.5)
            # Stored pre-transposed as (in, out) for lane-dense MXU matmuls.
            w = jax.random.uniform(kw, (fan_in, fan_out), jnp.float32, -bound, bound)
            b = jax.random.uniform(kb, (1, fan_out), jnp.float32, -bound, bound)
            return w, b

        self.w1, self.b1 = linear_init(k1, k2, in_channels, in_channels)
        self.w2, self.b2 = linear_init(k3, k4, in_channels, in_channels)
        self.w3, self.b3 = linear_init(k5, k6, in_channels, latent_size)

    def __call__(self, x):
        return aae_mnist_encoder_forward(
            x, self.w1, self.b1, self.w2, self.b2, self.w3, self.b3
        )

    def reference(self, x):
        """Plain-JAX reference of the same forward (for correctness checks)."""
        h = _leaky_relu(x @ self.w1 + self.b1)
        h = _leaky_relu(h @ self.w2 + self.b2)
        return h @ self.w3 + self.b3


if __name__ == "__main__":
    key = jax.random.PRNGKey(0)
    k_x, k_params = jax.random.split(key)

    # Small, lane-friendly shapes consistent with the module's forward:
    # x: (batch, in_channels) fed straight into Linear(in_channels, ...).
    batch, in_channels, latent_size = 8, 256, 32
    x = jax.random.normal(k_x, (batch, in_channels), dtype=jnp.float32)

    encoder = AAE_MNIST_Encoder(in_channels, latent_size, key=k_params)

    out = jax.block_until_ready(encoder(x))
    ref = encoder.reference(x)

    assert out.shape == (batch, latent_size)
    assert out.dtype == x.dtype
    assert jnp.allclose(out, ref, atol=1e-4, rtol=1e-4), float(
        jnp.max(jnp.abs(out - ref))
    )

    print("KERNEL_OK")
</pallas_src>

<mosaic_0001>
module attributes {stable_mosaic.version = 11 : i64} {
  func.func @_encoder_kernel(%arg0: i32, %arg1: memref<8x256xf32, #tpu.memory_space<vmem>>, %arg2: memref<256x256xf32, #tpu.memory_space<vmem>>, %arg3: memref<1x256xf32, #tpu.memory_space<vmem>>, %arg4: memref<256x256xf32, #tpu.memory_space<vmem>>, %arg5: memref<1x256xf32, #tpu.memory_space<vmem>>, %arg6: memref<256x32xf32, #tpu.memory_space<vmem>>, %arg7: memref<1x32xf32, #tpu.memory_space<vmem>>, %arg8: memref<8x32xf32, #tpu.memory_space<vmem>>) attributes {dimension_semantics = [#tpu.dimension_semantics<parallel>], iteration_bounds = array<i64: 1>, scalar_prefetch = 0 : i64, scratch_operands = 0 : i64, tpu.core_type = #tpu.core_type<tc>, window_params = [{transform_indices = @transform_0, window_bounds = array<i64: 8, 256>}, {pipeline_mode = #tpu.pipeline_mode<synchronous>, transform_indices = @transform_1, window_bounds = array<i64: 256, 256>}, {pipeline_mode = #tpu.pipeline_mode<synchronous>, transform_indices = @transform_2, window_bounds = array<i64: 1, 256>}, {pipeline_mode = #tpu.pipeline_mode<synchronous>, transform_indices = @transform_3, window_bounds = array<i64: 256, 256>}, {pipeline_mode = #tpu.pipeline_mode<synchronous>, transform_indices = @transform_4, window_bounds = array<i64: 1, 256>}, {pipeline_mode = #tpu.pipeline_mode<synchronous>, transform_indices = @transform_5, window_bounds = array<i64: 256, 32>}, {pipeline_mode = #tpu.pipeline_mode<synchronous>, transform_indices = @transform_6, window_bounds = array<i64: 1, 32>}, {transform_indices = @transform_7, window_bounds = array<i64: 8, 32>}]} {
    %c0 = arith.constant 0 : index
    %c0_0 = arith.constant 0 : index
    %0 = vector.load %arg1[%c0, %c0_0] : memref<8x256xf32, #tpu.memory_space<vmem>>, vector<8x256xf32>
    %c0_1 = arith.constant 0 : index
    %c0_2 = arith.constant 0 : index
    %1 = vector.load %arg2[%c0_1, %c0_2] : memref<256x256xf32, #tpu.memory_space<vmem>>, vector<256x256xf32>
    %cst = arith.constant dense<0.000000e+00> : vector<8x256xf32>
    %2 = tpu.matmul %0, %1, %cst {dimension_numbers = #tpu.dot_dimension_numbers<[1], [0], [0], [1], [0, 0, 1, 1], [], []>} : vector<8x256xf32>, vector<256x256xf32>, vector<8x256xf32> -> vector<8x256xf32>
    %c0_3 = arith.constant 0 : index
    %c0_4 = arith.constant 0 : index
    %3 = vector.load %arg3[%c0_3, %c0_4] : memref<1x256xf32, #tpu.memory_space<vmem>>, vector<1x256xf32>
    %4 = vector.broadcast %3 : vector<1x256xf32> to vector<8x256xf32>
    %5 = arith.addf %2, %4 : vector<8x256xf32>
    %cst_5 = arith.constant 0.000000e+00 : f32
    %6 = vector.broadcast %cst_5 : f32 to vector<8x256xf32>
    %7 = arith.cmpf oge, %5, %6 : vector<8x256xf32>
    %cst_6 = arith.constant 2.000000e-01 : f32
    %8 = vector.broadcast %cst_6 : f32 to vector<8x256xf32>
    %9 = arith.mulf %8, %5 : vector<8x256xf32>
    %10 = arith.select %7, %5, %9 : vector<8x256xi1>, vector<8x256xf32>
    %c0_7 = arith.constant 0 : index
    %c0_8 = arith.constant 0 : index
    %11 = vector.load %arg4[%c0_7, %c0_8] : memref<256x256xf32, #tpu.memory_space<vmem>>, vector<256x256xf32>
    %cst_9 = arith.constant dense<0.000000e+00> : vector<8x256xf32>
    %12 = tpu.matmul %10, %11, %cst_9 {dimension_numbers = #tpu.dot_dimension_numbers<[1], [0], [0], [1], [0, 0, 1, 1], [], []>} : vector<8x256xf32>, vector<256x256xf32>, vector<8x256xf32> -> vector<8x256xf32>
    %c0_10 = arith.constant 0 : index
    %c0_11 = arith.constant 0 : index
    %13 = vector.load %arg5[%c0_10, %c0_11] : memref<1x256xf32, #tpu.memory_space<vmem>>, vector<1x256xf32>
    %14 = vector.broadcast %13 : vector<1x256xf32> to vector<8x256xf32>
    %15 = arith.addf %12, %14 : vector<8x256xf32>
    %cst_12 = arith.constant 0.000000e+00 : f32
    %16 = vector.broadcast %cst_12 : f32 to vector<8x256xf32>
    %17 = arith.cmpf oge, %15, %16 : vector<8x256xf32>
    %cst_13 = arith.constant 2.000000e-01 : f32
    %18 = vector.broadcast %cst_13 : f32 to vector<8x256xf32>
    %19 = arith.mulf %18, %15 : vector<8x256xf32>
    %20 = arith.select %17, %15, %19 : vector<8x256xi1>, vector<8x256xf32>
    %c0_14 = arith.constant 0 : index
    %c0_15 = arith.constant 0 : index
    %21 = vector.load %arg6[%c0_14, %c0_15] : memref<256x32xf32, #tpu.memory_space<vmem>>, vector<256x32xf32>
    %cst_16 = arith.constant dense<0.000000e+00> : vector<8x32xf32>
    %22 = tpu.matmul %20, %21, %cst_16 {dimension_numbers = #tpu.dot_dimension_numbers<[1], [0], [0], [1], [0, 0, 1, 1], [], []>} : vector<8x256xf32>, vector<256x32xf32>, vector<8x32xf32> -> vector<8x32xf32>
    %c0_17 = arith.constant 0 : index
    %c0_18 = arith.constant 0 : index
    %23 = vector.load %arg7[%c0_17, %c0_18] : memref<1x32xf32, #tpu.memory_space<vmem>>, vector<1x32xf32>
    %24 = vector.broadcast %23 : vector<1x32xf32> to vector<8x32xf32>
    %25 = arith.addf %22, %24 : vector<8x32xf32>
    %c0_19 = arith.constant 0 : index
    %c0_20 = arith.constant 0 : index
    %26 = vector.load %arg8[%c0_19, %c0_20] : memref<8x32xf32, #tpu.memory_space<vmem>>, vector<8x32xf32>
    tpu.vector_store %arg8[%c0_19, %c0_20], %25 {strides = array<i32>} : memref<8x32xf32, #tpu.memory_space<vmem>>, vector<8x32xf32>,
    return
  }
  func.func @transform_0(%arg0: i32) -> (i32, i32) {
    %c0_i32 = arith.constant 0 : i32
    %c0_i32_0 = arith.constant 0 : i32
    return %arg0, %c0_i32 : i32, i32
  }
  func.func @transform_1(%arg0: i32) -> (i32, i32) {
    %c0_i32 = arith.constant 0 : i32
    %c0_i32_0 = arith.constant 0 : i32
    %c0_i32_1 = arith.constant 0 : i32
    return %c0_i32, %c0_i32_0 : i32, i32
  }
  func.func @transform_2(%arg0: i32) -> (i32, i32) {
    %c0_i32 = arith.constant 0 : i32
    %c0_i32_0 = arith.constant 0 : i32
    %c0_i32_1 = arith.constant 0 : i32
    return %c0_i32, %c0_i32_0 : i32, i32
  }
  func.func @transform_3(%arg0: i32) -> (i32, i32) {
    %c0_i32 = arith.constant 0 : i32
    %c0_i32_0 = arith.constant 0 : i32
    %c0_i32_1 = arith.constant 0 : i32
    return %c0_i32, %c0_i32_0 : i32, i32
  }
  func.func @transform_4(%arg0: i32) -> (i32, i32) {
    %c0_i32 = arith.constant 0 : i32
    %c0_i32_0 = arith.constant 0 : i32
    %c0_i32_1 = arith.constant 0 : i32
    return %c0_i32, %c0_i32_0 : i32, i32
  }
  func.func @transform_5(%arg0: i32) -> (i32, i32) {
    %c0_i32 = arith.constant 0 : i32
    %c0_i32_0 = arith.constant 0 : i32
    %c0_i32_1 = arith.constant 0 : i32
    return %c0_i32, %c0_i32_0 : i32, i32
  }
  func.func @transform_6(%arg0: i32) -> (i32, i32) {
    %c0_i32 = arith.constant 0 : i32
    %c0_i32_0 = arith.constant 0 : i32
    %c0_i32_1 = arith.constant 0 : i32
    return %c0_i32, %c0_i32_0 : i32, i32
  }
  func.func @transform_7(%arg0: i32) -> (i32, i32) {
    %c0_i32 = arith.constant 0 : i32
    %c0_i32_0 = arith.constant 0 : i32
    return %arg0, %c0_i32 : i32, i32
  }
}

</mosaic_0001>

<bundles_post_ra>
// kernel: tpu_custom_call.1
= control target key start
LH: loop header
LB: loop body
LE: loop exit
PB: predicated region body
PF: predicated region fallthrough
CT: control target
= control target key end

     0   :  { %12 = vsyncpa [#allocation3], 0  ;;  %s955_s0 = inlined_call_operand.vmem [shape: f32[8,256], index: 0, kind: input, shape index: {}]   ;;  %s956_s1 = inlined_call_operand.hbm [shape: f32[256,256], index: 1, kind: input, shape index: {}]   ;;  %s957_s2 = inlined_call_operand.vmem [shape: f32[1,256], index: 2, kind: input, shape index: {}]   ;;  %s958_s3 = inlined_call_operand.hbm [shape: f32[256,256], index: 3, kind: input, shape index: {}]   ;;  %s959_s4 = inlined_call_operand.vmem [shape: f32[1,256], index: 4, kind: input, shape index: {}]   ;;  %s960_s5 = inlined_call_operand.vmem [shape: f32[256,32], index: 5, kind: input, shape index: {}]   ;;  %s961_s6 = inlined_call_operand.vmem [shape: f32[1,32], index: 6, kind: input, shape index: {}]   ;;  %s962_s7 = inlined_call_operand.hbm [shape: f32[8,32], index: 7, kind: output, shape index: {}]  }
   0x1   :  { %13 = vsyncpa [#allocation6], 0 }
   0x2   :  { %14 = vsyncpa [#allocation4], 0  ;;  %s763_s24 = smov [#allocation2]   ;;  %s691_s28 = scalar_lea.hbm %s956_s1, 8192 }
   0x3   :  { %s22_s25 = sshll.u32 %s763_s24, 4  ;;  %p692_p0 = scmp.ne.s32.totalorder %s956_s1, %s691_s28  ;;  %s23_s25 = int_to_ptr.vmem [resolvable:$true] %s22_s25 }
   0x4   :  { %p695_p1 = scmp.lt.u32.totalorder %s691_s28, %s956_s1 }
   0x6   :  { %p697_p2 = pnand %p695_p1, %p692_p0 }
   0x8   :  { %700 = shalt.err (!%p697_p2)
}
   0x9   :  { %s701_s10 = scalar_lea.vmem %s23_s25, 8192  ;;  %p706_p4 = scmp.lt.s32.totalorder %s23_s25, %s23_s25 }
   0xa   :  { %p702_p3 = scmp.ne.s32.totalorder %s23_s25, %s701_s10  ;;  %p707_p5 = scmp.lt.s32.totalorder %s701_s10, %s701_s10 }
   0xc   :  { %p708_p6 = por %p707_p5, %p706_p4 }
   0xe   :  { %p709_p7 = pnand %p708_p6, %p702_p3 }
  0x10   :  { %712 = shalt.err (!%p709_p7)
}
  0x11   :  { %s764_s11 = smov 256   ;;  %s765_s12 = smov 16  }
  0x12   :  { %28 = dma.hbm_to_vmem [thread:$0]  %s956_s1, 8192, %s23_s25, [#allocation3], %s764_s11, %s764_s11, %s765_s12  }
  0x13   :  { %s766_s15 = smov [#allocation5]   ;;  %s713_s19 = scalar_lea.hbm %s958_s3, 8192 }
  0x14   :  { %s36_s16 = sshll.u32 %s766_s15, 4  ;;  %p714_p8 = scmp.ne.s32.totalorder %s958_s3, %s713_s19  ;;  %s37_s16 = int_to_ptr.vmem [resolvable:$true] %s36_s16 }
  0x15   :  { %p717_p9 = scmp.lt.u32.totalorder %s713_s19, %s958_s3 }
  0x17   :  { %p719_p10 = pnand %p717_p9, %p714_p8 }
  0x19   :  { %722 = shalt.err (!%p719_p10)
}
  0x1a   :  { %s723_s24 = scalar_lea.vmem %s37_s16, 8192  ;;  %p728_p12 = scmp.lt.s32.totalorder %s37_s16, %s37_s16 }
  0x1b   :  { %p724_p11 = scmp.ne.s32.totalorder %s37_s16, %s723_s24  ;;  %p729_p13 = scmp.lt.s32.totalorder %s723_s24, %s723_s24 }
  0x1d   :  { %p730_p0 = por %p729_p13, %p728_p12 }
  0x1f   :  { %p731_p1 = pnand %p730_p0, %p724_p11 }
  0x21   :  { %734 = shalt.err (!%p731_p1)
}
  0x22   :  { %42 = dma.hbm_to_vmem [thread:$0]  %s958_s3, 8192, %s37_s16, [#allocation6], %s764_s11, %s764_s11, %s765_s12  }
  0x23   :  { %757 = dma.done.wait [#allocation3], 8192  }
  0x24   :  { %758 = vsyncadd [#allocation3], 4294959104 }
  0x25   :  { %759 = dma.done.wait [#allocation6], 8192  }
  0x26   :  { %760 = vsyncadd [#allocation6], 4294959104  ;;  %v58_v0 = vld [vmem:[#allocation2 + $0x8] sm:$0xff]  ;;  %v60_v1 = vld [vmem:[#allocation2 + $0x18] sm:$0xff]  ;;  %vm472_vm4 = vcmask 261120  }
  0x27   :  { %v57_v2 = vld [vmem:[#allocation2] sm:$0xff]  ;;  %v526_v3 = vpack.c.bf16 %v60_v1, %v58_v0  ;;  %v59_v4 = vld [vmem:[#allocation2 + $0x10] sm:$0xff]  ;;  %v62_v5 = vld [vmem:[#allocation2 + $0x28] sm:$0xff] }
  0x28   :  { %v64_v6 = vld [vmem:[#allocation2 + $0x38] sm:$0xff]  ;;  %v528_v7 = vpack.c.bf16 %v59_v4, %v57_v2  ;;  %v61_v9 = vld [vmem:[#allocation2 + $0x20] sm:$0xff]  ;;  %v63_v10 = vld [vmem:[#allocation2 + $0x30] sm:$0xff] }
  0x29   :  { %v530_v8 = vpack.c.bf16 %v64_v6, %v62_v5  ;;  %v66_v11 = vld [vmem:[#allocation2 + $0x48] sm:$0xff]  ;;  %527 = vmatprep.subr.bf16.mxu0 %v526_v3  ;;  %v68_v12 = vld [vmem:[#allocation2 + $0x58] sm:$0xff]  ;;  %v532_v13 = vpack.c.bf16 %v63_v10, %v61_v9  ;;  %v65_v15 = vld [vmem:[#allocation2 + $0x40] sm:$0xff] }
  0x2a   :  { %529 = vmatpush1.bf16.msra.mxu0 %v528_v7  ;;  %v534_v14 = vpack.c.bf16 %v68_v12, %v66_v11  ;;  %v67_v16 = vld [vmem:[#allocation2 + $0x50] sm:$0xff]  ;;  %v70_v17 = vld [vmem:[#allocation2 + $0x68] sm:$0xff]  ;;  %v72_v18 = vld [vmem:[#allocation2 + $0x78] sm:$0xff] }
  0x2b   :  { %531 = vmatprep.subr.bf16.mxu0 %v530_v8  ;;  %v536_v19 = vpack.c.bf16 %v67_v16, %v65_v15  ;;  %v538_v20 = vpack.c.bf16 %v72_v18, %v70_v17  ;;  %v69_v21 = vld [vmem:[#allocation2 + $0x60] sm:$0xff]  ;;  %v71_v22 = vld [vmem:[#allocation2 + $0x70] sm:$0xff]  ;;  %v74_v23 = vld [vmem:[#allocation2 + $0x88] sm:$0xff] }
  0x2c   :  { %v76_v24 = vld [vmem:[#allocation2 + $0x98] sm:$0xff]  ;;  %v540_v25 = vpack.c.bf16 %v71_v22, %v69_v21  ;;  %v73_v27 = vld [vmem:[#allocation2 + $0x80] sm:$0xff]  ;;  %v75_v28 = vld [vmem:[#allocation2 + $0x90] sm:$0xff] }
  0x2d   :  { %v542_v26 = vpack.c.bf16 %v76_v24, %v74_v23  ;;  %v78_v29 = vld [vmem:[#allocation2 + $0xa8] sm:$0xff]  ;;  %v80_v30 = vld [vmem:[#allocation2 + $0xb8] sm:$0xff]  ;;  %v544_v31 = vpack.c.bf16 %v75_v28, %v73_v27  ;;  %v77_v33 = vld [vmem:[#allocation2 + $0xa0] sm:$0xff] }
  0x2e   :  { %533 = vmatpush1.bf16.msra.mxu0 %v532_v13  ;;  %v546_v32 = vpack.c.bf16 %v80_v30, %v78_v29  ;;  %v79_v34 = vld [vmem:[#allocation2 + $0xb0] sm:$0xff]  ;;  %v82_v35 = vld [vmem:[#allocation2 + $0xc8] sm:$0xff]  ;;  %v84_v36 = vld [vmem:[#allocation2 + $0xd8] sm:$0xff] }
  0x2f   :  { %535 = vmatprep.subr.bf16.mxu0 %v534_v14  ;;  %v548_v37 = vpack.c.bf16 %v79_v34, %v77_v33  ;;  %v81_v38 = vld [vmem:[#allocation2 + $0xc0] sm:$0xff]  ;;  %v83_v39 = vld [vmem:[#allocation2 + $0xd0] sm:$0xff]  ;;  %v550_v40 = vpack.c.bf16 %v84_v36, %v82_v35  ;;  %v86_v41 = vld [vmem:[#allocation2 + $0xe8] sm:$0xff] }
  0x30   :  { %v88_v42 = vld [vmem:[#allocation2 + $0xf8] sm:$0xff]  ;;  %v56_v43 = vld [vmem:[%s955_s0 + $0x8] sm:$0xff]  ;;  %v210_v46 = vld [vmem:[#allocation5] sm:$0xff]  ;;  %v552_v51 = vpack.c.bf16 %v83_v39, %v81_v38 }
  0x31   :  { %197 = vmatprep.mubr.f32.mxu0 %v56_v43  ;;  %v211_v44 = vld [vmem:[#allocation5 + $0x8] sm:$0xff]  ;;  %v213_v45 = vld [vmem:[#allocation5 + $0x18] sm:$0xff]  ;;  %v212_v48 = vld [vmem:[#allocation5 + $0x10] sm:$0xff]  ;;  %v554_v57 = vpack.c.bf16 %v88_v42, %v86_v41 }
  0x32   :  { %537 = vmatpush1.bf16.msra.mxu0 %v536_v19  ;;  %v590_v47 = vpack.c.bf16 %v213_v45, %v211_v44  ;;  %v215_v49 = vld [vmem:[#allocation5 + $0x28] sm:$0xff]  ;;  %v217_v50 = vld [vmem:[#allocation5 + $0x38] sm:$0xff]  ;;  %v592_v52 = vpack.c.bf16 %v212_v48, %v210_v46  ;;  %v214_v54 = vld [vmem:[#allocation5 + $0x20] sm:$0xff] }
  0x33   :  { %539 = vmatprep.subr.bf16.mxu0 %v538_v20  ;;  %v594_v53 = vpack.c.bf16 %v217_v50, %v215_v49  ;;  %v216_v55 = vld [vmem:[#allocation5 + $0x30] sm:$0xff]  ;;  %v219_v56 = vld [vmem:[#allocation5 + $0x48] sm:$0xff]  ;;  %v85_v58 = vld [vmem:[#allocation2 + $0xe0] sm:$0xff] }
  0x34   :  { %v87_v59 = vld [vmem:[#allocation2 + $0xf0] sm:$0xff]  ;;  %591 = vmatprep.subr.bf16.mxu1 %v590_v47  ;;  %v221_v60 = vld [vmem:[#allocation5 + $0x58] sm:$0xff]  ;;  %v90_v61 = vld [vmem:[#allocation2 + $0x108] sm:$0xff]  ;;  %v596_v63 = vpack.c.bf16 %v216_v55, %v214_v54 }
  0x35   :  { %v92_v62 = vld [vmem:[#allocation2 + $0x118] sm:$0xff]  ;;  %593 = vmatpush1.bf16.msra.mxu1 %v592_v52  ;;  %v598_v0 = vpack.c.bf16 %v221_v60, %v219_v56  ;;  %v218_v1 = vld [vmem:[#allocation5 + $0x40] sm:$0xff]  ;;  %v220_v2 = vld [vmem:[#allocation5 + $0x50] sm:$0xff]  ;;  %v556_v3 = vpack.c.bf16 %v87_v59, %v85_v58 }
  0x36   :  { %541 = vmatpush1.bf16.msra.mxu0 %v540_v25  ;;  %595 = vmatprep.subr.bf16.mxu1 %v594_v53  ;;  %v223_v4 = vld [vmem:[#allocation5 + $0x68] sm:$0xff]  ;;  %v225_v5 = vld [vmem:[#allocation5 + $0x78] sm:$0xff]  ;;  %v558_v6 = vpack.c.bf16 %v92_v62, %v90_v61  ;;  %v89_v7 = vld [vmem:[#allocation2 + $0x100] sm:$0xff]  ;;  %v600_v11 = vpack.c.bf16 %v220_v2, %v218_v1 }
  0x37   :  { %543 = vmatprep.subr.bf16.mxu0 %v542_v26  ;;  %v91_v8 = vld [vmem:[#allocation2 + $0x110] sm:$0xff]  ;;  %v94_v9 = vld [vmem:[#allocation2 + $0x128] sm:$0xff]  ;;  %v96_v10 = vld [vmem:[#allocation2 + $0x138] sm:$0xff]  ;;  %v602_v12 = vpack.c.bf16 %v225_v5, %v223_v4 }
  0x38   :  { %v222_v13 = vld [vmem:[#allocation5 + $0x60] sm:$0xff]  ;;  %v224_v14 = vld [vmem:[#allocation5 + $0x70] sm:$0xff]  ;;  %v560_v15 = vpack.c.bf16 %v91_v8, %v89_v7  ;;  %v227_v16 = vld [vmem:[#allocation5 + $0x88] sm:$0xff]  ;;  %v562_v18 = vpack.c.bf16 %v96_v10, %v94_v9 }
  0x39   :  { %597 = vmatpush1.bf16.msra.mxu1 %v596_v63  ;;  %v229_v17 = vld [vmem:[#allocation5 + $0x98] sm:$0xff]  ;;  %v93_v19 = vld [vmem:[#allocation2 + $0x120] sm:$0xff]  ;;  %v95_v20 = vld [vmem:[#allocation2 + $0x130] sm:$0xff]  ;;  %v604_v23 = vpack.c.bf16 %v224_v14, %v222_v13 }
  0x3a   :  { %545 = vmatpush1.bf16.msra.mxu0 %v544_v31  ;;  %599 = vmatprep.subr.bf16.mxu1 %v598_v0  ;;  %v98_v21 = vld [vmem:[#allocation2 + $0x148] sm:$0xff]  ;;  %v100_v22 = vld [vmem:[#allocation2 + $0x158] sm:$0xff]  ;;  %v606_v24 = vpack.c.bf16 %v229_v17, %v227_v16  ;;  %v226_v25 = vld [vmem:[#allocation5 + $0x80] sm:$0xff]  ;;  %v564_v27 = vpack.c.bf16 %v95_v20, %v93_v19 }
  0x3b   :  { %547 = vmatprep.subr.bf16.mxu0 %v546_v32  ;;  %v228_v26 = vld [vmem:[#allocation5 + $0x90] sm:$0xff]  ;;  %v231_v28 = vld [vmem:[#allocation5 + $0xa8] sm:$0xff]  ;;  %v233_v29 = vld [vmem:[#allocation5 + $0xb8] sm:$0xff]  ;;  %v566_v30 = vpack.c.bf16 %v100_v22, %v98_v21 }
  0x3c   :  { %v97_v31 = vld [vmem:[#allocation2 + $0x140] sm:$0xff]  ;;  %v99_v32 = vld [vmem:[#allocation2 + $0x150] sm:$0xff]  ;;  %v102_v33 = vld [vmem:[#allocation2 + $0x168] sm:$0xff]  ;;  %v608_v35 = vpack.c.bf16 %v228_v26, %v226_v25  ;;  %v610_v36 = vpack.c.bf16 %v233_v29, %v231_v28 }
  0x3d   :  { %601 = vmatpush1.bf16.msra.mxu1 %v600_v11  ;;  %v104_v34 = vld [vmem:[#allocation2 + $0x178] sm:$0xff]  ;;  %v232_v38 = vld [vmem:[#allocation5 + $0xb0] sm:$0xff]  ;;  %v568_v39 = vpack.c.bf16 %v99_v32, %v97_v31  ;;  %v101_v43 = vld [vmem:[#allocation2 + $0x160] sm:$0xff] }
  0x3e   :  { %549 = vmatpush1.bf16.msra.mxu0 %v548_v37  ;;  %603 = vmatprep.subr.bf16.mxu1 %v602_v12  ;;  %v230_v37 = vld [vmem:[#allocation5 + $0xa0] sm:$0xff]  ;;  %v237_v41 = vld [vmem:[#allocation5 + $0xd8] sm:$0xff]  ;;  %v570_v42 = vpack.c.bf16 %v104_v34, %v102_v33  ;;  %v103_v44 = vld [vmem:[#allocation2 + $0x170] sm:$0xff] }
  0x3f   :  { %551 = vmatprep.subr.bf16.mxu0 %v550_v40  ;;  %v235_v40 = vld [vmem:[#allocation5 + $0xc8] sm:$0xff]  ;;  %v108_v46 = vld [vmem:[#allocation2 + $0x198] sm:$0xff]  ;;  %v612_v47 = vpack.c.bf16 %v232_v38, %v230_v37  ;;  %v234_v49 = vld [vmem:[#allocation5 + $0xc0] sm:$0xff] }
  0x40   :  { %v106_v45 = vld [vmem:[#allocation2 + $0x188] sm:$0xff]  ;;  %v614_v48 = vpack.c.bf16 %v237_v41, %v235_v40  ;;  %v236_v50 = vld [vmem:[#allocation5 + $0xd0] sm:$0xff]  ;;  %v241_v53 = vld [vmem:[#allocation5 + $0xf8] sm:$0xff] }
  0x41   :  { %605 = vmatpush1.bf16.msra.mxu1 %v604_v23  ;;  %v239_v52 = vld [vmem:[#allocation5 + $0xe8] sm:$0xff]  ;;  %v574_v54 = vpack.c.bf16 %v108_v46, %v106_v45  ;;  %v105_v55 = vld [vmem:[#allocation2 + $0x180] sm:$0xff]  ;;  %v107_v56 = vld [vmem:[#allocation2 + $0x190] sm:$0xff]  ;;  %v616_v59 = vpack.c.bf16 %v236_v50, %v234_v49 }
  0x42   :  { %553 = vmatpush1.bf16.msra.mxu0 %v552_v51  ;;  %607 = vmatprep.subr.bf16.mxu1 %v606_v24  ;;  %v572_v51 = vpack.c.bf16 %v103_v44, %v101_v43  ;;  %v112_v58 = vld [vmem:[#allocation2 + $0x1b8] sm:$0xff]  ;;  %v618_v60 = vpack.c.bf16 %v241_v53, %v239_v52  ;;  %v238_v61 = vld [vmem:[#allocation5 + $0xe0] sm:$0xff]  ;;  %v240_v62 = vld [vmem:[#allocation5 + $0xf0] sm:$0xff]  ;;  %v576_v63 = vpack.c.bf16 %v107_v56, %v105_v55 }
  0x43   :  { %555 = vmatprep.subr.bf16.mxu0 %v554_v57  ;;  %v110_v57 = vld [vmem:[#allocation2 + $0x1a8] sm:$0xff]  ;;  %v245_v1 = vld [vmem:[#allocation5 + $0x118] sm:$0xff]  ;;  %v111_v4 = vld [vmem:[#allocation2 + $0x1b0] sm:$0xff]  ;;  %v620_v7 = vpack.c.bf16 %v240_v62, %v238_v61 }
  0x44   :  { %v243_v0 = vld [vmem:[#allocation5 + $0x108] sm:$0xff]  ;;  %v578_v2 = vpack.c.bf16 %v112_v58, %v110_v57  ;;  %v242_v9 = vld [vmem:[#allocation5 + $0x100] sm:$0xff]  ;;  %v244_v10 = vld [vmem:[#allocation5 + $0x110] sm:$0xff] }
  0x45   :  { %609 = vmatpush1.bf16.msra.mxu1 %v608_v35  ;;  %v114_v5 = vld [vmem:[#allocation2 + $0x1c8] sm:$0xff]  ;;  %v622_v8 = vpack.c.bf16 %v245_v1, %v243_v0  ;;  %v249_v13 = vld [vmem:[#allocation5 + $0x138] sm:$0xff]  ;;  %v115_v16 = vld [vmem:[#allocation2 + $0x1d0] sm:$0xff]  ;;  %v624_v19 = vpack.c.bf16 %v244_v10, %v242_v9 }
  0x46   :  { %557 = vmatpush1.bf16.msra.mxu0 %v556_v3  ;;  %611 = vmatprep.subr.bf16.mxu1 %v610_v36  ;;  %v109_v3 = vld [vmem:[#allocation2 + $0x1a0] sm:$0xff]  ;;  %v247_v12 = vld [vmem:[#allocation5 + $0x128] sm:$0xff]  ;;  %v248_v22 = vld [vmem:[#allocation5 + $0x130] sm:$0xff] }
  0x47   :  { %559 = vmatprep.subr.bf16.mxu0 %v558_v6  ;;  %v116_v6 = vld [vmem:[#allocation2 + $0x1d8] sm:$0xff]  ;;  %v580_v11 = vpack.c.bf16 %v111_v4, %v109_v3  ;;  %v118_v17 = vld [vmem:[#allocation2 + $0x1e8] sm:$0xff]  ;;  %v626_v20 = vpack.c.bf16 %v249_v13, %v247_v12  ;;  %v246_v21 = vld [vmem:[#allocation5 + $0x120] sm:$0xff] }
  0x48   :  { %v582_v14 = vpack.c.bf16 %v116_v6, %v114_v5  ;;  %v251_v24 = vld [vmem:[#allocation5 + $0x148] sm:$0xff]  ;;  %v253_v25 = vld [vmem:[#allocation5 + $0x158] sm:$0xff]  ;;  %v119_v28 = vld [vmem:[#allocation2 + $0x1f0] sm:$0xff]  ;;  %v628_v29 = vpack.c.bf16 %v248_v22, %v246_v21 }
  0x49   :  { %613 = vmatpush1.bf16.msra.mxu1 %v612_v47  ;;  %v250_v31 = vld [vmem:[#allocation5 + $0x140] sm:$0xff]  ;;  %v252_v32 = vld [vmem:[#allocation5 + $0x150] sm:$0xff]  ;;  %v255_v34 = vld [vmem:[#allocation5 + $0x168] sm:$0xff] }
  0x4a   :  { %561 = vmatpush1.bf16.msra.mxu0 %v560_v15  ;;  %615 = vmatprep.subr.bf16.mxu1 %v614_v48  ;;  %v113_v15 = vld [vmem:[#allocation2 + $0x1c0] sm:$0xff]  ;;  %v257_v35 = vld [vmem:[#allocation5 + $0x178] sm:$0xff]  ;;  %v632_v36 = vpack.c.bf16 %v252_v32, %v250_v31  ;;  %v259_v41 = vld [vmem:[#allocation5 + $0x188] sm:$0xff] }
  0x4b   :  { %563 = vmatprep.subr.bf16.mxu0 %v562_v18  ;;  %v120_v18 = vld [vmem:[#allocation2 + $0x1f8] sm:$0xff]  ;;  %v584_v23 = vpack.c.bf16 %v115_v16, %v113_v15  ;;  %v634_v37 = vpack.c.bf16 %v257_v35, %v255_v34  ;;  %v254_v38 = vld [vmem:[#allocation5 + $0x160] sm:$0xff]  ;;  %v260_v46 = vld [vmem:[#allocation5 + $0x190] sm:$0xff] }
  0x4c   :  { %v586_v26 = vpack.c.bf16 %v120_v18, %v118_v17  ;;  %v55_v40 = vld [vmem:[%s955_s0] sm:$0xff]  ;;  %v263_v47 = vld [vmem:[#allocation5 + $0x1a8] sm:$0xff]  ;;  %v265_v48 = vld [vmem:[#allocation5 + $0x1b8] sm:$0xff] }
  0x4d   :  { %617 = vmatpush1.bf16.msra.mxu1 %v616_v59  ;;  %v258_v45 = vld [vmem:[#allocation5 + $0x180] sm:$0xff]  ;;  %v642_v50 = vpack.c.bf16 %v265_v48, %v263_v47  ;;  %v264_v52 = vld [vmem:[#allocation5 + $0x1b0] sm:$0xff]  ;;  %v269_v55 = vld [vmem:[#allocation5 + $0x1d8] sm:$0xff] }
  0x4e   :  { %565 = vmatpush1.bf16.msra.mxu0 %v564_v27  ;;  %619 = vmatprep.subr.bf16.mxu1 %v618_v60  ;;  %v117_v27 = vld [vmem:[#allocation2 + $0x1e0] sm:$0xff]  ;;  %v640_v49 = vpack.c.bf16 %v260_v46, %v258_v45  ;;  %v268_v58 = vld [vmem:[#allocation5 + $0x1d0] sm:$0xff]  ;;  %v271_v60 = vld [vmem:[#allocation5 + $0x1e8] sm:$0xff] }
  0x4f   :  { %567 = vmatprep.subr.bf16.mxu0 %v566_v30  ;;  %v630_v30 = vpack.c.bf16 %v253_v25, %v251_v24  ;;  %v588_v33 = vpack.c.bf16 %v119_v28, %v117_v27  ;;  %v266_v57 = vld [vmem:[#allocation5 + $0x1c0] sm:$0xff]  ;;  %v273_v61 = vld [vmem:[#allocation5 + $0x1f8] sm:$0xff]  ;;  %v272_v0 = vld [vmem:[#allocation5 + $0x1f0] sm:$0xff] }
  0x50   :  { %v648_v59 = vpack.c.bf16 %v268_v58, %v266_v57  ;;  %v650_v62 = vpack.c.bf16 %v273_v61, %v271_v60  ;;  %v380_v3 = vld [vmem:[%s960_s5 + $0x88] sm:$0xff]  ;;  %v363_v4 = vld [vmem:[%s960_s5] sm:$0xff]  ;;  %v366_v12 = vld [vmem:[%s960_s5 + $0x18] sm:$0xff] }
  0x51   :  { %621 = vmatpush1.bf16.msra.mxu1 %v620_v7  ;;  %v364_v6 = vld [vmem:[%s960_s5 + $0x8] sm:$0xff]  ;;  %v381_v7 = vld [vmem:[%s960_s5 + $0x90] sm:$0xff]  ;;  %v383_v13 = vld [vmem:[%s960_s5 + $0xa0] sm:$0xff] }
  0x52   :  { %569 = vmatpush1.bf16.msra.mxu0 %v568_v39  ;;  %623 = vmatprep.subr.bf16.mxu1 %v622_v8  ;;  %v256_v39 = vld [vmem:[#allocation5 + $0x170] sm:$0xff]  ;;  %v382_v8 = vld [vmem:[%s960_s5 + $0x98] sm:$0xff]  ;;  %v656_v9 = vpack.c.bf16 %v364_v6, %v363_v4  ;;  %v367_v17 = vld [vmem:[%s960_s5 + $0x20] sm:$0xff] }
  0x53   :  { %571 = vmatprep.subr.bf16.mxu0 %v570_v42  ;;  %v261_v42 = vld [vmem:[#allocation5 + $0x198] sm:$0xff]  ;;  %v636_v43 = vpack.c.bf16 %v256_v39, %v254_v38  ;;  %v658_v10 = vpack.c.bf16 %v382_v8, %v381_v7  ;;  %v368_v18 = vld [vmem:[%s960_s5 + $0x28] sm:$0xff]  ;;  %v387_v25 = vld [vmem:[%s960_s5 + $0xc0] sm:$0xff]  ;;  %v123_v38 = vlaneseq }
  0x54   :  { %v638_v44 = vpack.c.bf16 %v261_v42, %v259_v41  ;;  %v664_v21 = vpack.c.bf16 %v368_v18, %v367_v17  ;;  %v370_v24 = vld [vmem:[%s960_s5 + $0x38] sm:$0xff]  ;;  %v389_v31 = vld [vmem:[%s960_s5 + $0xd0] sm:$0xff]  ;;  %v121_v41 = vld [vmem:[%s957_s2] sm:$0x3] }
  0x55   :  { %625 = vmatpush1.bf16.msra.mxu1 %v624_v19  ;;  %v385_v19 = vld [vmem:[%s960_s5 + $0xb0] sm:$0xff]  ;;  %v390_v32 = vld [vmem:[%s960_s5 + $0xd8] sm:$0xff]  ;;  %v124_v39 = vshrl.u32 %v123_v38, 7  ;;  %v376_v57 = vld [vmem:[%s960_s5 + $0x68] sm:$0xff] }
  0x56   :  { %573 = vmatpush1.bf16.msra.mxu0 %v572_v51  ;;  %627 = vmatprep.subr.bf16.mxu1 %v626_v20  ;;  %v262_v51 = vld [vmem:[#allocation5 + $0x1a0] sm:$0xff]  ;;  %v386_v20 = vld [vmem:[%s960_s5 + $0xb8] sm:$0xff]  ;;  %v674_v34 = vpack.c.bf16 %v390_v32, %v389_v31  ;;  %v373_v35 = vld [vmem:[%s960_s5 + $0x50] sm:$0xff] }
  0x57   :  { %575 = vmatprep.subr.bf16.mxu0 %v574_v54  ;;  %v644_v53 = vpack.c.bf16 %v264_v52, %v262_v51  ;;  %v267_v54 = vld [vmem:[#allocation5 + $0x1c8] sm:$0xff]  ;;  %v666_v22 = vpack.c.bf16 %v386_v20, %v385_v19  ;;  %v129_v42 = vsub.s32 1, %v124_v39  ;;  %v394_v60 = vld [vmem:[%s960_s5 + $0xf8] sm:$0xff] }
  0x58   :  { %v646_v56 = vpack.c.bf16 %v269_v55, %v267_v54  ;;  %v392_v54 = vld [vmem:[%s960_s5 + $0xe8] sm:$0xff] }
  0x59   :  { %629 = vmatpush1.bf16.msra.mxu1 %v628_v29  ;;  %v371_v29 = vld [vmem:[%s960_s5 + $0x40] sm:$0xff] }
  0x5a   :  { %577 = vmatpush1.bf16.msra.mxu0 %v576_v63  ;;  %631 = vmatprep.subr.bf16.mxu1 %v630_v30  ;;  %v270_v63 = vld [vmem:[#allocation5 + $0x1e0] sm:$0xff]  ;;  %v372_v30 = vld [vmem:[%s960_s5 + $0x48] sm:$0xff] }
  0x5b   :  { %579 = vmatprep.subr.bf16.mxu0 %v578_v2  ;;  %v652_v1 = vpack.c.bf16 %v272_v0, %v270_v63  ;;  %v379_v2 = vld [vmem:[%s960_s5 + $0x80] sm:$0xff]  ;;  %v378_v63 = vld [vmem:[%s960_s5 + $0x78] sm:$0xff] }
  0x5c   :  { %v654_v5 = vpack.c.bf16 %v380_v3, %v379_v2 }
  0x5d   :  { %633 = vmatpush1.bf16.msra.mxu1 %v632_v36  ;;  %v374_v36 = vld [vmem:[%s960_s5 + $0x58] sm:$0xff] }
  0x5e   :  { %581 = vmatpush1.bf16.msra.mxu0 %v580_v11  ;;  %635 = vmatprep.subr.bf16.mxu1 %v634_v37  ;;  %v365_v11 = vld [vmem:[%s960_s5 + $0x10] sm:$0xff]  ;;  %v676_v37 = vpack.c.bf16 %v374_v36, %v373_v35 }
  0x5f   :  { %583 = vmatprep.subr.bf16.mxu0 %v582_v14  ;;  %v384_v14 = vld [vmem:[%s960_s5 + $0xa8] sm:$0xff]  ;;  %v660_v15 = vpack.c.bf16 %v366_v12, %v365_v11 }
  0x60   :  { %v662_v16 = vpack.c.bf16 %v384_v14, %v383_v13  ;;  %v490_v13 = vld [vmem:[%s961_s6] ss:$0 sm:$0xff] }
  0x61   :  { %637 = vmatpush1.bf16.msra.mxu1 %v636_v43 }
  0x62   :  { %585 = vmatpush1.bf16.msra.mxu0 %v584_v23  ;;  %639 = vmatprep.subr.bf16.mxu1 %v638_v44  ;;  %v369_v23 = vld [vmem:[%s960_s5 + $0x30] sm:$0xff]  ;;  %v130_v44 = vrot.slane %v121_v41, %v129_v42 }
  0x63   :  { %587 = vmatprep.subr.bf16.mxu0 %v586_v26  ;;  %v388_v26 = vld [vmem:[%s960_s5 + $0xc8] sm:$0xff]  ;;  %v668_v27 = vpack.c.bf16 %v370_v24, %v369_v23 }
  0x64   :  { %v670_v28 = vpack.c.bf16 %v388_v26, %v387_v25 }
  0x65   :  { %641 = vmatpush1.bf16.msra.mxu1 %v640_v49 }
  0x66   :  { %589 = vmatpush1.bf16.msra.mxu0 %v588_v33  ;;  %643 = vmatprep.subr.bf16.mxu1 %v642_v50  ;;  %v672_v33 = vpack.c.bf16 %v372_v30, %v371_v29 }
  0x67   :  { %655 = vmatprep.subr.bf16.mxu0 %v654_v5 }
  0x69   :  { %198 = vmatmul.mubr.f32.vlgmr.msra.gmra.mrb[0].mxu0 %v55_v40  ;;  %645 = vmatpush1.bf16.msra.mxu1 %v644_v53  ;;  %v125_v40 = vsub.s32 0, %v124_v39  ;;  %v391_v53 = vld [vmem:[%s960_s5 + $0xe0] sm:$0xff] }
  0x6a   :  { %647 = vmatprep.subr.bf16.mxu1 %v646_v56  ;;  %657 = vmatpush3.bf16.msra.mxu0 %v656_v9  ;;  %v678_v55 = vpack.c.bf16 %v392_v54, %v391_v53  ;;  %v375_v56 = vld [vmem:[%s960_s5 + $0x60] sm:$0xff] }
  0x6b   :  { %659 = vmatprep.subr.bf16.mxu0 %v658_v10  ;;  %v126_v43 = vrot.slane %v121_v41, %v125_v40  ;;  %v680_v58 = vpack.c.bf16 %v376_v57, %v375_v56 }
  0x6d   :  { %649 = vmatpush1.bf16.msra.mxu1 %v648_v59  ;;  %v393_v59 = vld [vmem:[%s960_s5 + $0xf0] sm:$0xff] }
  0x6e   :  { %651 = vmatprep.subr.bf16.mxu1 %v650_v62  ;;  %661 = vmatpush3.bf16.msra.mxu0 %v660_v15  ;;  %v682_v61 = vpack.c.bf16 %v394_v60, %v393_v59  ;;  %v377_v62 = vld [vmem:[%s960_s5 + $0x70] sm:$0xff] }
  0x6f   :  { %663 = vmatprep.subr.bf16.mxu0 %v662_v16  ;;  %v684_v0 = vpack.c.bf16 %v378_v63, %v377_v62 }
  0x71   :  { %653 = vmatpush1.bf16.msra.mxu1 %v652_v1  ;;  %v274_v1 = vld [vmem:[%s959_s4] sm:$0x3]  ;;  %s767_s4 = smov [#allocation7]  }
  0x72   :  { %665 = vmatpush3.bf16.msra.mxu0 %v664_v21  ;;  %v279_v2 = vrot.slane %v274_v1, %v125_v40  ;;  %v283_v3 = vrot.slane %v274_v1, %v129_v42  ;;  %s480_s21 = sshll.u32 %s767_s4, 4  ;;  %s481_s21 = int_to_ptr.vmem [resolvable:$true] %s480_s21 }
  0x73   :  { %667 = vmatprep.subr.bf16.mxu0 %v666_v22  ;;  %s735_s22 = scalar_lea.vmem %s481_s21, 128  ;;  %p740_p3 = scmp.lt.s32.totalorder %s481_s21, %s481_s21 }
  0x74   :  { %p736_p2 = scmp.ne.s32.totalorder %s481_s21, %s735_s22  ;;  %p741_p4 = scmp.lt.s32.totalorder %s735_s22, %s735_s22 }
  0x76   :  { %669 = vmatpush3.bf16.msra.mxu0 %v668_v27  ;;  %p742_p5 = por %p741_p4, %p740_p3 }
  0x77   :  { %671 = vmatprep.subr.bf16.mxu0 %v670_v28 }
  0x78   :  { %p743_p6 = pnand %p742_p5, %p736_p2 }
  0x7a   :  { %673 = vmatpush3.bf16.msra.mxu0 %v672_v33 }
  0x7b   :  { %675 = vmatprep.subr.bf16.mxu0 %v674_v34 }
  0x7e   :  { %677 = vmatpush3.bf16.msra.mxu0 %v676_v37 }
  0x7f   :  { %679 = vmatprep.subr.bf16.mxu0 %v678_v55 }
  0x82   :  { %681 = vmatpush3.bf16.msra.mxu0 %v680_v58 }
  0x83   :  { %683 = vmatprep.subr.bf16.mxu0 %v682_v61 }
  0x86   :  { %685 = vmatpush3.bf16.msra.mxu0 %v684_v0 }
 0x13c   :  { %v199_v45 = vpop.f32.mrb[0].mxu0 }
 0x13d   :  { %v200_v46 = vadd.f32 %v199_v45, %v126_v43  ;;  %v201_v47 = vpop.f32.mrb[1].mxu0 }
 0x13e   :  { %v202_v48 = vadd.f32 %v201_v47, %v130_v44 }
 0x13f   :  { %v206_v49 = vmul.f32 0.2, %v200_v46  ;;  %vm204_vm1 = vcmp.ge.f32.partialorder %v200_v46, 0.0 }
 0x140   :  { %vm205_vm0 = vcmp.ge.f32.partialorder %v202_v48, 0.0  ;;  %v207_v50 = vmul.f32 0.2, %v202_v48 }
 0x141   :  { %v208_v52 = vsel %vm204_vm1, %v200_v46, %v206_v49 }
 0x142   :  { %v209_v51 = vsel %vm205_vm0, %v202_v48, %v207_v50 }
 0x143   :  { %350 = vmatprep.mubr.f32.mxu1 %v209_v51 }
 0x144   :  { %351 = vmatmul.mubr.f32.vlgmr.msra.gmra.mrb[0].mxu1 %v208_v52 }
 0x217   :  { %v352_v4 = vpop.f32.mrb[0].mxu1 }
 0x218   :  { %v353_v5 = vadd.f32 %v352_v4, %v279_v2  ;;  %v354_v6 = vpop.f32.mrb[1].mxu1 }
 0x219   :  { %v355_v7 = vadd.f32 %v354_v6, %v283_v3 }
 0x21a   :  { %v359_v8 = vmul.f32 0.2, %v353_v5  ;;  %vm357_vm2 = vcmp.ge.f32.partialorder %v353_v5, 0.0 }
 0x21b   :  { %v360_v9 = vmul.f32 0.2, %v355_v7  ;;  %vm358_vm3 = vcmp.ge.f32.partialorder %v355_v7, 0.0 }
 0x21c   :  { %v361_v11 = vsel %vm357_vm2, %v353_v5, %v359_v8 }
 0x21d   :  { %v362_v10 = vsel %vm358_vm3, %v355_v7, %v360_v9 }
 0x21e   :  { %466 = vmatprep.mubr.f32.mxu0 %v362_v10 }
 0x21f   :  { %467 = vmatmul.mubr.f32.vlgmr.msra.gmra.mrb[2].mxu0 %v361_v11 }
 0x2f2   :  { %v523_v12 = vpop.f32.mrb[2].mxu0 }
 0x2f3   :  { %v524_v14 = vpop.f32.mrb[3].mxu0 }
 0x2f4   :  { %v525_v15 = vadd.f32 %v524_v14, %v523_v12 }
 0x2f6   :  { %v469_v16 = vadd.f32 %v525_v15, %v490_v13 }
 0x2f8   :  { %473 = vst.msk [vmem:[#allocation7] sm:$0xff] %vm472_vm4, %v469_v16 }
 0x2f9   :  { %746 = shalt.err (!%p743_p6)
}
 0x2fa   :  { %s747_s1 = scalar_lea.hbm %s962_s7, 128 }
 0x2fb   :  { %p748_p7 = scmp.ne.s32.totalorder %s962_s7, %s747_s1  ;;  %p751_p8 = scmp.lt.u32.totalorder %s747_s1, %s962_s7 }
 0x2fd   :  { %p753_p9 = pnand %p751_p8, %p748_p7 }
 0x2ff   :  { %756 = shalt.err (!%p753_p9)
}
 0x300   :  { %483 = dma.vmem_to_hbm [thread:$0]  %s481_s21, 128, %s962_s7, [#allocation4]  }
 0x301   :  { %761 = dma.done.wait [#allocation4], 128  }
 0x302   :  { %762 = vsyncadd [#allocation4], 4294967168 }
 0x303   :  { %487 = vsyncpa [#allocation3], 1 }
 0x304   :  { %488 = vsyncpa [#allocation6], 1 }
 0x305   :  { %489 = vsyncpa [#allocation4], 1 }

</bundles_post_ra>
